<compile_context>
chip_gen: v7x
topology: tpu7x:2x2x1
jax: 0.10.0
libtpu: 0.0.40
codegen_flags: <defaults>
</compile_context>

<pallas_src>
import jax
import jax.numpy as jnp
from jax import lax
from jax.experimental import pallas as pl
from jax.experimental.pallas import tpu as pltpu


# --------------------------------------------------------------------------- #
# Kernel
# --------------------------------------------------------------------------- #
def _patch_proj_kernel(x_ref, w_ref, b_ref, o_ref):
    # x_ref: (bt_blk, K, tn) bf16 -- patch columns for bt_blk batch*time rows
    # w_ref: (E, K)          bf16 -- full projection weight (constant index_map
    #                               -> DMA'd once, stays resident)
    # b_ref: (E, 1)          f32
    # o_ref: (bt_blk, E, tn) bf16/f32 -- channel-major output tiles
    w = w_ref[...]
    b = b_ref[...]
    for i in range(x_ref.shape[0]):          # bt_blk is a small static block dim
        acc = jnp.dot(w, x_ref[i], preferred_element_type=jnp.float32)
        o_ref[i] = (acc + b).astype(o_ref.dtype)


# --------------------------------------------------------------------------- #
# Tiling heuristics
# --------------------------------------------------------------------------- #
def _choose_tn(N, per_n_bytes, budget):
    """Largest legal N-tile: full N when it fits the per-step budget, otherwise
    the largest divisor of N that is a multiple of 128 (lane-dense, no padding,
    no post-kernel slice).  Falls back to full N (VMEM limit raised then)."""
    if N * per_n_bytes <= budget:
        return N
    tn_max = max(128, budget // per_n_bytes)
    for tn in range(min(N - 1, tn_max), 127, -1):
        if N % tn == 0 and tn % 128 == 0:
            return tn
    return N


def _choose_bt_blk(BT, n_tiles, per_bt_bytes, budget):
    """Largest bt block that (a) divides BT, (b) keeps the per-step working set
    under budget, and (c) leaves >= 2 grid steps (when >= 2 steps of work exist)
    so the v7x megacore split has work on both TensorCores."""
    best = 1
    for bt in range(1, BT + 1):
        if BT % bt:
            continue
        if bt * per_bt_bytes > budget:
            break
        if (BT // bt) * n_tiles < 2 and BT * n_tiles >= 2:
            continue
        best = bt
    return best


# --------------------------------------------------------------------------- #
# pallas_call wrapper
# --------------------------------------------------------------------------- #
def _patch_project(x_kn, w_mat, bias, *, tn, bt_blk, out_dtype):
    BT, K, N = x_kn.shape
    E = w_mat.shape[0]
    assert N % tn == 0 and BT % bt_blk == 0
    grid = (BT // bt_blk, N // tn)

    in_b = x_kn.dtype.itemsize
    out_b = jnp.dtype(out_dtype).itemsize
    flops = 2 * BT * N * K * E
    bytes_accessed = (x_kn.size * in_b + w_mat.size * in_b + bias.size * 4
                      + BT * E * N * out_b)

    cp_kwargs = dict(dimension_semantics=("parallel", "parallel"))
    # Double-buffered per-step working set + resident weight/bias (lane-padded).
    vmem_est = (2 * bt_blk * tn * (K * in_b + E * out_b)
                + E * (max(K, 128) * in_b + 4 * 128))
    if vmem_est > 12 * 1024 * 1024:
        try:
            cap = int(pltpu.get_tpu_info().vmem_capacity_bytes * 0.45)
        except Exception:
            cap = 28 << 20            # conservative fallback, safe on v7x (64 MiB/TC)
        cap = max(cap, 16 << 20)
        cp_kwargs["vmem_limit_bytes"] = min(int(1.25 * vmem_est) + (2 << 20), cap)

    return pl.pallas_call(
        _patch_proj_kernel,
        out_shape=jax.ShapeDtypeStruct((BT, E, N), out_dtype),
        grid_spec=pltpu.PrefetchScalarGridSpec(
            num_scalar_prefetch=0,
            grid=grid,
            in_specs=[
                pl.BlockSpec((bt_blk, K, tn), lambda b, j: (b, 0, j)),
                pl.BlockSpec((E, K), lambda b, j: (0, 0)),
                pl.BlockSpec((E, 1), lambda b, j: (0, 0)),
            ],
            out_specs=pl.BlockSpec((bt_blk, E, tn), lambda b, j: (b, 0, j)),
        ),
        compiler_params=pltpu.CompilerParams(**cp_kwargs),
        cost_estimate=pl.CostEstimate(flops=flops, transcendentals=0,
                                      bytes_accessed=bytes_accessed),
    )(x_kn, w_mat, bias)


# --------------------------------------------------------------------------- #
# Public entry point: PatchEmbedTimeSerie.forward
# --------------------------------------------------------------------------- #
def patch_embed_time_serie(x, w_conv, b_conv, *, patch_size, time_span,
                           compute_dtype=jnp.bfloat16, out_dtype=jnp.bfloat16,
                           vmem_budget_bytes=4 << 20):
    """JAX/Pallas port of PatchEmbedTimeSerie.forward.

    x       : (B, C, H, W)    NCHW, like the PyTorch module
    w_conv  : (E, Cin, P, P)  Conv2d weight, Cin = C // time_span
    b_conv  : (E,)            Conv2d bias
    returns : (B, time_span * Hp * Wp, E)  out_dtype (default bf16)
    """
    B, C, H, W = x.shape
    assert C % time_span == 0, "channels must be divisible by time_span"
    Cin = C // time_span
    P = patch_size
    E = w_conv.shape[0]
    assert H % P == 0 and W % P == 0
    Hp, Wp = H // P, W // P
    N = Hp * Wp
    BT = B * time_span
    K = Cin * P * P

    # im2col to the (BT, K, N) layout: K (unpadded) on sublanes, N lane-dense.
    # The bf16 cast is fused by XLA into the transpose -> one read(f32)+write(bf16) pass.
    xr = x.astype(compute_dtype).reshape(BT, Cin, Hp, P, Wp, P)
    xr = jnp.transpose(xr, (0, 1, 3, 5, 2, 4))          # (BT, Cin, Ph, Pw, Hp, Wp)
    x_kn = xr.reshape(BT, K, N)

    w_mat = w_conv.reshape(E, K).astype(compute_dtype)  # no K padding
    bias = b_conv.reshape(E, 1).astype(jnp.float32)

    in_b = jnp.dtype(compute_dtype).itemsize
    out_b = jnp.dtype(out_dtype).itemsize
    per_n_bytes = K * in_b + E * out_b
    tn = _choose_tn(N, per_n_bytes, vmem_budget_bytes)
    bt_blk = _choose_bt_blk(BT, N // tn, tn * per_n_bytes, vmem_budget_bytes)

    y_cm = _patch_project(x_kn, w_mat, bias, tn=tn, bt_blk=bt_blk,
                          out_dtype=out_dtype)

    # PyTorch tail: flatten(2).view(B,T,-1,E).view(B,T*N,E) is a raw row-major
    # reinterpretation (a .view, not a transpose) of the channel-major buffer,
    # so it is a free reshape here.
    return y_cm.reshape(B, time_span * N, E)


# --------------------------------------------------------------------------- #
# Pure-JAX reference (lax.conv), reproducing the module's `.view` tail
# --------------------------------------------------------------------------- #
def _reference(x, w_conv, b_conv, *, patch_size, time_span):
    B, C, H, W = x.shape
    T = time_span
    Cin = C // T
    P = patch_size
    xr = x.reshape(B * T, Cin, H, W)
    y = lax.conv_general_dilated(
        xr, w_conv, window_strides=(P, P), padding="VALID",
        dimension_numbers=("NCHW", "OIHW", "NCHW"),
        precision=lax.Precision.HIGHEST)
    y = y + b_conv[None, :, None, None]                 # (BT, E, Hp, Wp)
    Hp, Wp = y.shape[2], y.shape[3]
    return y.reshape(B, T * Hp * Wp, y.shape[1])        # raw .view, like the module


if __name__ == "__main__":
    # Small, deterministic config consistent with the module
    # (in_chans divisible by time_span; patch_size divides H, W).
    B = 2
    time_span = 3
    in_chans = 6                       # Cin = in_chans // time_span = 2
    patch_size = 4                     # K = 2*4*4 = 32
    embed_dim = 128                    # lane-dense E
    H = W = 64                         # Hp = Wp = 16, N = 256

    Cin = in_chans // time_span

    key = jax.random.PRNGKey(0)
    kx, kw, kb = jax.random.split(key, 3)
    x = jax.random.normal(kx, (B, in_chans, H, W), dtype=jnp.float32)
    w_conv = 0.02 * jax.random.normal(
        kw, (embed_dim, Cin, patch_size, patch_size), dtype=jnp.float32)
    b_conv = 0.01 * jax.random.normal(kb, (embed_dim,), dtype=jnp.float32)

    fn = jax.jit(lambda a, w, b: patch_embed_time_serie(
        a, w, b, patch_size=patch_size, time_span=time_span))
    out = jax.block_until_ready(fn(x, w_conv, b_conv))

    # Reference from the same bf16-quantized inputs (kernel accumulates in f32,
    # stores bf16), so tolerances only need to cover the final bf16 rounding.
    x_q = x.astype(jnp.bfloat16).astype(jnp.float32)
    w_q = w_conv.astype(jnp.bfloat16).astype(jnp.float32)
    ref = _reference(x_q, w_q, b_conv, patch_size=patch_size, time_span=time_span)

    N = (H // patch_size) * (W // patch_size)
    assert out.shape == (B, time_span * N, embed_dim), out.shape
    assert out.dtype == jnp.bfloat16, out.dtype
    out_f32 = out.astype(jnp.float32)
    err = float(jnp.max(jnp.abs(out_f32 - ref)))
    assert jnp.allclose(out_f32, ref, atol=1e-2, rtol=1e-2), f"max abs err = {err}"

    print("KERNEL_OK")
</pallas_src>

<mosaic_0001>
module attributes {stable_mosaic.version = 11 : i64} {
  func.func @_patch_proj_kernel(%arg0: i32, %arg1: i32, %arg2: memref<3x32x256xbf16, #tpu.memory_space<vmem>>, %arg3: memref<128x32xbf16, #tpu.memory_space<vmem>>, %arg4: memref<128x1xf32, #tpu.memory_space<vmem>>, %arg5: memref<3x128x256xbf16, #tpu.memory_space<vmem>>) attributes {dimension_semantics = [#tpu.dimension_semantics<parallel>, #tpu.dimension_semantics<parallel>], iteration_bounds = array<i64: 2, 1>, scalar_prefetch = 0 : i64, scratch_operands = 0 : i64, tpu.core_type = #tpu.core_type<tc>, window_params = [{transform_indices = @transform_0, window_bounds = array<i64: 3, 32, 256>}, {pipeline_mode = #tpu.pipeline_mode<synchronous>, transform_indices = @transform_1, window_bounds = array<i64: 128, 32>}, {pipeline_mode = #tpu.pipeline_mode<synchronous>, transform_indices = @transform_2, window_bounds = array<i64: 128, 1>}, {transform_indices = @transform_3, window_bounds = array<i64: 3, 128, 256>}]} {
    %c0 = arith.constant 0 : index
    %c0_0 = arith.constant 0 : index
    %0 = vector.load %arg3[%c0, %c0_0] : memref<128x32xbf16, #tpu.memory_space<vmem>>, vector<128x32xbf16>
    %c0_1 = arith.constant 0 : index
    %c0_2 = arith.constant 0 : index
    %1 = vector.load %arg4[%c0_1, %c0_2] : memref<128x1xf32, #tpu.memory_space<vmem>>, vector<128x1xf32>
    %c0_3 = arith.constant 0 : index
    %c0_4 = arith.constant 0 : index
    %c0_5 = arith.constant 0 : index
    %2 = vector.load %arg2[%c0_3, %c0_4, %c0_5] : memref<3x32x256xbf16, #tpu.memory_space<vmem>>, vector<1x32x256xbf16>
    %3 = vector.shape_cast %2 : vector<1x32x256xbf16> to vector<32x256xbf16>
    %cst = arith.constant dense<0.000000e+00> : vector<128x256xf32>
    %4 = tpu.matmul %0, %3, %cst {dimension_numbers = #tpu.dot_dimension_numbers<[1], [0], [0], [1], [0, 0, 1, 1], [], []>} : vector<128x32xbf16>, vector<32x256xbf16>, vector<128x256xf32> -> vector<128x256xf32>
    %5 = vector.broadcast %1 : vector<128x1xf32> to vector<128x256xf32>
    %6 = arith.addf %4, %5 : vector<128x256xf32>
    %7 = arith.truncf %6 : vector<128x256xf32> to vector<128x256xbf16>
    %c0_6 = arith.constant 0 : index
    %c0_7 = arith.constant 0 : index
    %c0_8 = arith.constant 0 : index
    %8 = vector.load %arg5[%c0_6, %c0_7, %c0_8] : memref<3x128x256xbf16, #tpu.memory_space<vmem>>, vector<1x128x256xbf16>
    %9 = vector.shape_cast %8 : vector<1x128x256xbf16> to vector<128x256xbf16>
    %10 = vector.shape_cast %7 : vector<128x256xbf16> to vector<1x128x256xbf16>
    tpu.vector_store %arg5[%c0_6, %c0_7, %c0_8], %10 {strides = array<i32>} : memref<3x128x256xbf16, #tpu.memory_space<vmem>>, vector<1x128x256xbf16>,
    %c1 = arith.constant 1 : index
    %c0_9 = arith.constant 0 : index
    %c0_10 = arith.constant 0 : index
    %11 = vector.load %arg2[%c1, %c0_9, %c0_10] : memref<3x32x256xbf16, #tpu.memory_space<vmem>>, vector<1x32x256xbf16>
    %12 = vector.shape_cast %11 : vector<1x32x256xbf16> to vector<32x256xbf16>
    %cst_11 = arith.constant dense<0.000000e+00> : vector<128x256xf32>
    %13 = tpu.matmul %0, %12, %cst_11 {dimension_numbers = #tpu.dot_dimension_numbers<[1], [0], [0], [1], [0, 0, 1, 1], [], []>} : vector<128x32xbf16>, vector<32x256xbf16>, vector<128x256xf32> -> vector<128x256xf32>
    %14 = vector.broadcast %1 : vector<128x1xf32> to vector<128x256xf32>
    %15 = arith.addf %13, %14 : vector<128x256xf32>
    %16 = arith.truncf %15 : vector<128x256xf32> to vector<128x256xbf16>
    %c1_12 = arith.constant 1 : index
    %c0_13 = arith.constant 0 : index
    %c0_14 = arith.constant 0 : index
    %17 = vector.load %arg5[%c1_12, %c0_13, %c0_14] : memref<3x128x256xbf16, #tpu.memory_space<vmem>>, vector<1x128x256xbf16>
    %18 = vector.shape_cast %17 : vector<1x128x256xbf16> to vector<128x256xbf16>
    %19 = vector.shape_cast %16 : vector<128x256xbf16> to vector<1x128x256xbf16>
    tpu.vector_store %arg5[%c1_12, %c0_13, %c0_14], %19 {strides = array<i32>} : memref<3x128x256xbf16, #tpu.memory_space<vmem>>, vector<1x128x256xbf16>,
    %c2 = arith.constant 2 : index
    %c0_15 = arith.constant 0 : index
    %c0_16 = arith.constant 0 : index
    %20 = vector.load %arg2[%c2, %c0_15, %c0_16] : memref<3x32x256xbf16, #tpu.memory_space<vmem>>, vector<1x32x256xbf16>
    %21 = vector.shape_cast %20 : vector<1x32x256xbf16> to vector<32x256xbf16>
    %cst_17 = arith.constant dense<0.000000e+00> : vector<128x256xf32>
    %22 = tpu.matmul %0, %21, %cst_17 {dimension_numbers = #tpu.dot_dimension_numbers<[1], [0], [0], [1], [0, 0, 1, 1], [], []>} : vector<128x32xbf16>, vector<32x256xbf16>, vector<128x256xf32> -> vector<128x256xf32>
    %23 = vector.broadcast %1 : vector<128x1xf32> to vector<128x256xf32>
    %24 = arith.addf %22, %23 : vector<128x256xf32>
    %25 = arith.truncf %24 : vector<128x256xf32> to vector<128x256xbf16>
    %c2_18 = arith.constant 2 : index
    %c0_19 = arith.constant 0 : index
    %c0_20 = arith.constant 0 : index
    %26 = vector.load %arg5[%c2_18, %c0_19, %c0_20] : memref<3x128x256xbf16, #tpu.memory_space<vmem>>, vector<1x128x256xbf16>
    %27 = vector.shape_cast %26 : vector<1x128x256xbf16> to vector<128x256xbf16>
    %28 = vector.shape_cast %25 : vector<128x256xbf16> to vector<1x128x256xbf16>
    tpu.vector_store %arg5[%c2_18, %c0_19, %c0_20], %28 {strides = array<i32>} : memref<3x128x256xbf16, #tpu.memory_space<vmem>>, vector<1x128x256xbf16>,
    return
  }
  func.func @transform_0(%arg0: i32, %arg1: i32) -> (i32, i32, i32) {
    %c0_i32 = arith.constant 0 : i32
    %c0_i32_0 = arith.constant 0 : i32
    return %arg0, %c0_i32, %arg1 : i32, i32, i32
  }
  func.func @transform_1(%arg0: i32, %arg1: i32) -> (i32, i32) {
    %c0_i32 = arith.constant 0 : i32
    %c0_i32_0 = arith.constant 0 : i32
    %c0_i32_1 = arith.constant 0 : i32
    return %c0_i32, %c0_i32_0 : i32, i32
  }
  func.func @transform_2(%arg0: i32, %arg1: i32) -> (i32, i32) {
    %c0_i32 = arith.constant 0 : i32
    %c0_i32_0 = arith.constant 0 : i32
    %c0_i32_1 = arith.constant 0 : i32
    return %c0_i32, %c0_i32_0 : i32, i32
  }
  func.func @transform_3(%arg0: i32, %arg1: i32) -> (i32, i32, i32) {
    %c0_i32 = arith.constant 0 : i32
    %c0_i32_0 = arith.constant 0 : i32
    return %arg0, %c0_i32, %arg1 : i32, i32, i32
  }
}

</mosaic_0001>

<bundles_post_ra>
// kernel: _lambda_.1
= control target key start
LH: loop header
LB: loop body
LE: loop exit
PB: predicated region body
PF: predicated region fallthrough
CT: control target
= control target key end

     0   :  { %s1532_s12 = smov 0   ;;  %s1534_s13 = smov 0   ;;  %s1898_s0 = inlined_call_operand.vmem [shape: bf16[6,32,256], index: 0, kind: input, shape index: {}]   ;;  %s1899_s1 = inlined_call_operand.vmem [shape: bf16[128,32], index: 1, kind: input, shape index: {}]   ;;  %s1900_s2 = inlined_call_operand.vmem [shape: f32[128,1], index: 2, kind: input, shape index: {}]   ;;  %s1901_s3 = inlined_call_operand.vmem [shape: bf16[6,128,256], index: 3, kind: output, shape index: {}]  }
   0x1   :  { %s1536_s14 = smov 0  }
   0x2 LB: > { %s25_s15 = sadd.s32 1, %s1505_s13  ;;  %p1241_p0 = scmp.ge.s32.totalorder %s1509_s14, 1  ;;  %s1509_s14 = sphi %s1536_s14, %s13_s14   ;;  %s1505_s13 = sphi %s1534_s13, %s1903_s13   ;;  %s1501_s12 = sphi %s1532_s12, %s1902_s12  }
   0x3   : > { %p27_p1 = scmp.ge.s32.totalorder %s25_s15, 2  ;;  %p160_p2 = scmp.lt.s32.totalorder %s1509_s14, 3 }
   0x5   : > { %s1905_s15 = smov (%p27_p1, %s25_s15), 0  ;;  %p161_p3 = pnand %p1241_p0, %p160_p2 }
   0x6   : > { %s194_s16 = smul.u32 (!%p161_p3), 3, %s1501_s12  ;;  %v1511_v0 = vmov (!%p161_p3), 0   ;;  %v1571_v7 = vld [vmem:[%s1899_s1] sm:$0xff] (!%p161_p3)   ;;  %vm395_vm0 = vcmask (!%p161_p3), 261120   ;;  %v237_v12 = vld [vmem:[%s1900_s2 + $0x10] sm:$0xff] (!%p161_p3)  ;;  %v236_v17 = vld [vmem:[%s1900_s2 + $0x8] sm:$0xff] (!%p161_p3) }
   0x7   : > { %164 = sbr.rel (%p161_p3) target bundleno = 334 (0x14e), region = 32  ;;  %452 = vmatprep.mubr.bf16.mxu0 (!%p161_p3), %v1511_v0  ;;  %492 = vmatprep.mubr.bf16.mxu1 (!%p161_p3), %v1511_v0  ;;  %v1576_v8 = vld [vmem:[%s1899_s1 + $0x20] sm:$0xff] (!%p161_p3)   ;;  %v238_v18 = vld [vmem:[%s1900_s2 + $0x18] sm:$0xff] (!%p161_p3)  ;;  %v1475_v19 = vld [vmem:[%s1899_s1 + $0x8] sm:$0xff] (!%p161_p3)  }
   0x8   : > { %p196_p4 = scmp.lt.s32.totalorder (!%p161_p3), %s194_s16, 5  ;;  %1459 = vset.pattern.permute.xlu0 (!%p161_p3), %v1511_v0  ;;  %1460 = vset.pattern.permute.xlu1 (!%p161_p3), %v1511_v0  ;;  %v235_v11 = vld [vmem:[%s1900_s2] sm:$0xff] (!%p161_p3)  ;;  %v1608_v20 = vld [vmem:[%s1899_s1 + $0x28] sm:$0xff] (!%p161_p3)   ;;  %v241_v23 = vld [vmem:[%s1900_s2 + $0x30] sm:$0xff] (!%p161_p3) }
   0x9   : > { %257 = vperm.xlu0 (!%p161_p3), %1459, %v235_v11   ;;  %267 = vperm.xlu1 (!%p161_p3), %1460, %v237_v12   ;;  %v239_v21 = vld [vmem:[%s1900_s2 + $0x20] sm:$0xff] (!%p161_p3)  ;;  %v240_v22 = vld [vmem:[%s1900_s2 + $0x28] sm:$0xff] (!%p161_p3)  ;;  %v242_v24 = vld [vmem:[%s1900_s2 + $0x38] sm:$0xff] (!%p161_p3) }
   0xa   : > { %v1477_v25 = vld [vmem:[%s1899_s1 + $0x10] sm:$0xff] (!%p161_p3)   ;;  %v243_v27 = vld [vmem:[%s1900_s2 + $0x40] sm:$0xff] (!%p161_p3)  ;;  %v244_v28 = vld [vmem:[%s1900_s2 + $0x48] sm:$0xff] (!%p161_p3) }
   0xb   : > { %v1478_v26 = vld [vmem:[%s1899_s1 + $0x30] sm:$0xff] (!%p161_p3)   ;;  %v246_v30 = vld [vmem:[%s1900_s2 + $0x58] sm:$0xff] (!%p161_p3)  ;;  %v247_v33 = vld [vmem:[%s1900_s2 + $0x60] sm:$0xff] (!%p161_p3) }
   0xc   : > { %v245_v29 = vld [vmem:[%s1900_s2 + $0x50] sm:$0xff] (!%p161_p3)  ;;  %v1485_v31 = vld [vmem:[%s1899_s1 + $0x18] sm:$0xff] (!%p161_p3)   ;;  %v248_v34 = vld [vmem:[%s1900_s2 + $0x68] sm:$0xff] (!%p161_p3) }
   0xd   : > { %262 = vperm.xlu0 (!%p161_p3), %1459, %v236_v17   ;;  %272 = vperm.xlu1 (!%p161_p3), %1460, %v238_v18   ;;  %v1486_v32 = vld [vmem:[%s1899_s1 + $0x38] sm:$0xff] (!%p161_p3)   ;;  %v249_v35 = vld [vmem:[%s1900_s2 + $0x70] sm:$0xff] (!%p161_p3) }
   0xe   : > { %s1907_s16 = smov (!%p196_p4, %s194_s16), 5  ;;  %v250_v36 = vld [vmem:[%s1900_s2 + $0x78] sm:$0xff] }
   0xf   : > { %s1380_s17 = sshll.u32 %s1907_s16, 5  ;;  %s1381_s23 = sshll.u32 %s1907_s16, 7 }
  0x10   : > { %s1560_s20 = scalar_lea.vmem %s1898_s0, %s1380_s17  ;;  %s1735_s26 = scalar_lea.vmem %s1901_s3, %s1381_s23 }
  0x11   : > { %v1461_v1 = vld [vmem:[%s1560_s20 + $0x4] ss:$8 sps:$4 sm:$0xff]   ;;  %v1463_v2 = vld [vmem:[%s1560_s20] ss:$8 sps:$4 sm:$0xff]   ;;  %v1464_v3 = vld [vmem:[%s1560_s20 + $0x14] ss:$8 sps:$4 sm:$0xff]   ;;  %277 = vperm.xlu0 %1459, %v239_v21   ;;  %282 = vperm.xlu1 %1460, %v240_v22  }
  0x12   : > { %420 = vmatprep.subr.bf16.mxu0 %v1461_v1  ;;  %1430 = vmatprep.subr.bf16.mxu1 %v1461_v1  ;;  %v1466_v4 = vld [vmem:[%s1560_s20 + $0x10] ss:$8 sps:$4 sm:$0xff]   ;;  %v1471_v5 = vld [vmem:[%s1560_s20 + $0x24] ss:$8 sps:$4 sm:$0xff]   ;;  %v1469_v9 = vld [vmem:[%s1560_s20 + $0x20] ss:$8 sps:$4 sm:$0xff]  }
  0x13   : > { %421 = vmatpush1.bf16.msra.mxu0 %v1463_v2  ;;  %1432 = vmatpush1.bf16.msra.mxu1 %v1463_v2  ;;  %v1474_v6 = vld [vmem:[%s1560_s20 + $0x44] ss:$8 sps:$4 sm:$0xff]   ;;  %v1472_v10 = vld [vmem:[%s1560_s20 + $0x40] ss:$8 sps:$4 sm:$0xff]   ;;  %v1481_v13 = vld [vmem:[%s1560_s20 + $0x34] ss:$8 sps:$4 sm:$0xff]  }
  0x14   : > { %422 = vmatprep.subr.bf16.mxu0 %v1464_v3  ;;  %1431 = vmatprep.subr.bf16.mxu1 %v1464_v3  ;;  %v1484_v14 = vld [vmem:[%s1560_s20 + $0x54] ss:$8 sps:$4 sm:$0xff]   ;;  %v1479_v15 = vld [vmem:[%s1560_s20 + $0x30] ss:$8 sps:$4 sm:$0xff]  }
  0x15   : > { %v1482_v16 = vld [vmem:[%s1560_s20 + $0x50] ss:$8 sps:$4 sm:$0xff]   ;;  %287 = vperm.xlu0 %1459, %v241_v23   ;;  %292 = vperm.xlu1 %1460, %v242_v24  }
  0x17   : > { %423 = vmatpush1.bf16.msra.mxu0 %v1466_v4  ;;  %1433 = vmatpush1.bf16.msra.mxu1 %v1466_v4 }
  0x18   : > { %670 = vmatprep.subr.bf16.mxu1 %v1471_v5  ;;  %921 = vmatprep.subr.bf16.mxu0 %v1474_v6 }
  0x19   : > { %297 = vperm.xlu0 %1459, %v243_v27   ;;  %302 = vperm.xlu1 %1460, %v244_v28  }
  0x1a   : > { %1258 = vmatmul.mubr.msk.bf16.vlgmr.msra.gmra.mrb[0].mxu0 %vm395_vm0, %v1571_v7  ;;  %1262 = vmatmul.mubr.msk.bf16.vlgmr.msra.gmra.mrb[0].mxu1 %vm395_vm0, %v1576_v8 }
  0x1b   : > { %671 = vmatpush1.bf16.msra.mxu1 %v1469_v9  ;;  %922 = vmatpush1.bf16.msra.mxu0 %v1472_v10 }
  0x1c   : > { %462 = vmatprep.mubr.bf16.mxu0 %v1511_v0  ;;  %502 = vmatprep.mubr.bf16.mxu1 %v1511_v0 }
  0x1d   : > { %672 = vmatprep.subr.bf16.mxu1 %v1481_v13  ;;  %923 = vmatprep.subr.bf16.mxu0 %v1484_v14 }
  0x1e   : > { %307 = vperm.xlu0 %1459, %v245_v29   ;;  %312 = vperm.xlu1 %1460, %v246_v30  }
  0x1f   : > { %673 = vmatpush1.bf16.msra.mxu1 %v1479_v15  ;;  %924 = vmatpush1.bf16.msra.mxu0 %v1482_v16 }
  0x22   : > { %1259 = vmatmul.mubr.msk.bf16.gmra.mrb[4].mxu0 %vm395_vm0, %v1475_v19  ;;  %1263 = vmatmul.mubr.msk.bf16.gmra.mrb[4].mxu1 %vm395_vm0, %v1608_v20 }
  0x23   : > { %472 = vmatprep.mubr.bf16.mxu0 %v1511_v0  ;;  %512 = vmatprep.mubr.bf16.mxu1 %v1511_v0 }
  0x24   : > { %317 = vperm.xlu0 %1459, %v247_v33   ;;  %322 = vperm.xlu1 %1460, %v248_v34  }
  0x28   : > { %327 = vperm.xlu0 %1459, %v249_v35   ;;  %332 = vperm.xlu1 %1460, %v250_v36  }
  0x2a   : > { %1260 = vmatmul.mubr.msk.bf16.gmra.mrb[8].mxu0 %vm395_vm0, %v1477_v25  ;;  %1264 = vmatmul.mubr.msk.bf16.gmra.mrb[8].mxu1 %vm395_vm0, %v1478_v26 }
  0x2b   : > { %482 = vmatprep.mubr.bf16.mxu0 %v1511_v0  ;;  %522 = vmatprep.mubr.bf16.mxu1 %v1511_v0 }
  0x32   : > { %1261 = vmatmul.mubr.msk.bf16.gmra.mrb[12].mxu0 %vm395_vm0, %v1485_v31  ;;  %1265 = vmatmul.mubr.msk.bf16.gmra.mrb[12].mxu1 %vm395_vm0, %v1486_v32 }
  0x33   : > { %702 = vmatprep.mubr.bf16.mxu1 %v1511_v0  ;;  %953 = vmatprep.mubr.bf16.mxu0 %v1511_v0 }
  0x3a   : > { %1290 = vmatmul.mubr.msk.bf16.vlgmr.msra.gmra.mrb[16].mxu1 %vm395_vm0, %v1571_v7  ;;  %1338 = vmatmul.mubr.msk.bf16.vlgmr.msra.gmra.mrb[16].mxu0 %vm395_vm0, %v1571_v7 }
  0x3b   : > { %712 = vmatprep.mubr.bf16.mxu1 %v1511_v0  ;;  %963 = vmatprep.mubr.bf16.mxu0 %v1511_v0 }
  0x42   : > { %1291 = vmatmul.mubr.msk.bf16.gmra.mrb[20].mxu1 %vm395_vm0, %v1475_v19  ;;  %1339 = vmatmul.mubr.msk.bf16.gmra.mrb[20].mxu0 %vm395_vm0, %v1475_v19 }
  0x43   : > { %722 = vmatprep.mubr.bf16.mxu1 %v1511_v0  ;;  %973 = vmatprep.mubr.bf16.mxu0 %v1511_v0 }
  0x4a   : > { %1292 = vmatmul.mubr.msk.bf16.gmra.mrb[24].mxu1 %vm395_vm0, %v1477_v25  ;;  %1340 = vmatmul.mubr.msk.bf16.gmra.mrb[24].mxu0 %vm395_vm0, %v1477_v25 }
  0x4b   : > { %732 = vmatprep.mubr.bf16.mxu1 %v1511_v0  ;;  %983 = vmatprep.mubr.bf16.mxu0 %v1511_v0 }
  0x52   : > { %1293 = vmatmul.mubr.msk.bf16.gmra.mrb[28].mxu1 %vm395_vm0, %v1485_v31  ;;  %1341 = vmatmul.mubr.msk.bf16.gmra.mrb[28].mxu0 %vm395_vm0, %v1485_v31 }
  0x53   : > { %742 = vmatprep.mubr.bf16.mxu1 %v1511_v0  ;;  %993 = vmatprep.mubr.bf16.mxu0 %v1511_v0 }
  0x5a   : > { %1294 = vmatmul.mubr.msk.bf16.gmra.mrb[32].mxu1 %vm395_vm0, %v1576_v8  ;;  %1342 = vmatmul.mubr.msk.bf16.gmra.mrb[32].mxu0 %vm395_vm0, %v1576_v8 }
  0x5b   : > { %752 = vmatprep.mubr.bf16.mxu1 %v1511_v0  ;;  %1003 = vmatprep.mubr.bf16.mxu0 %v1511_v0 }
  0x62   : > { %1295 = vmatmul.mubr.msk.bf16.gmra.mrb[36].mxu1 %vm395_vm0, %v1608_v20  ;;  %1343 = vmatmul.mubr.msk.bf16.gmra.mrb[36].mxu0 %vm395_vm0, %v1608_v20 }
  0x63   : > { %762 = vmatprep.mubr.bf16.mxu1 %v1511_v0  ;;  %1013 = vmatprep.mubr.bf16.mxu0 %v1511_v0 }
  0x6a   : > { %1296 = vmatmul.mubr.msk.bf16.gmra.mrb[40].mxu1 %vm395_vm0, %v1478_v26  ;;  %1344 = vmatmul.mubr.msk.bf16.gmra.mrb[40].mxu0 %vm395_vm0, %v1478_v26 }
  0x6b   : > { %772 = vmatprep.mubr.bf16.mxu1 %v1511_v0  ;;  %1023 = vmatprep.mubr.bf16.mxu0 %v1511_v0 }
  0x72   : > { %1297 = vmatmul.mubr.msk.bf16.gmra.mrb[44].mxu1 %vm395_vm0, %v1486_v32  ;;  %1345 = vmatmul.mubr.msk.bf16.gmra.mrb[44].mxu0 %vm395_vm0, %v1486_v32 }
  0x88   : > { %v1707_v37 = vpop.permute.xlu0 %257  ;;  %v1709_v38 = vpop.permute.xlu1 %267 }
  0x8c   : > { %v1711_v39 = vpop.permute.xlu0 %262  ;;  %v1713_v40 = vpop.permute.xlu1 %272 }
  0x90   : > { %v1715_v41 = vpop.permute.xlu0 %277  ;;  %v1717_v42 = vpop.permute.xlu1 %282 }
  0x94   : > { %v1719_v43 = vpop.permute.xlu0 %287  ;;  %v1721_v44 = vpop.permute.xlu1 %292 }
  0x98   : > { %v1723_v45 = vpop.permute.xlu0 %297  ;;  %v1725_v46 = vpop.permute.xlu1 %302 }
  0x9d   : > { %v1743_v3 = vpop.permute.xlu0 %307  ;;  %v1745_v4 = vpop.permute.xlu1 %312 }
  0xa3   : > { %v1759_v25 = vpop.permute.xlu0 %317  ;;  %v1761_v26 = vpop.permute.xlu1 %322 }
  0xed   : > { %v454_v47 = vpop.f32.mrb[0].mxu0  ;;  %v494_v48 = vpop.f32.mrb[0].mxu1 }
  0xee   : > { %v455_v49 = vadd.f32 %v454_v47, %v1707_v37  ;;  %v456_v50 = vpop.f32.mrb[1].mxu0  ;;  %v495_v51 = vadd.f32 %v494_v48, %v1723_v45  ;;  %v496_v52 = vpop.f32.mrb[1].mxu1 }
  0xef   : > { %v457_v53 = vadd.f32 %v456_v50, %v1707_v37  ;;  %v497_v54 = vadd.f32 %v496_v52, %v1723_v45  ;;  %v458_v55 = vpop.f32.mrb[2].mxu0  ;;  %v498_v56 = vpop.f32.mrb[2].mxu1 }
  0xf0   : > { %v459_v57 = vadd.f32 %v458_v55, %v1711_v39  ;;  %v499_v58 = vadd.f32 %v498_v56, %v1725_v46  ;;  %v460_v59 = vpop.f32.mrb[3].mxu0  ;;  %v500_v60 = vpop.f32.mrb[3].mxu1 }
  0xf1   : > { %v1382_v61 = vpack.c.bf16 %v457_v53, %v455_v49  ;;  %v1390_v62 = vpack.c.bf16 %v497_v54, %v495_v51  ;;  %v461_v63 = vadd.f32 %v460_v59, %v1711_v39  ;;  %v501_v0 = vadd.f32 %v500_v60, %v1725_v46 }
  0xf3   : > { %629 = vst [vmem:[%s1735_s26] sm:$0xff] %v1382_v61  ;;  %637 = vst [vmem:[%s1735_s26 + $0x40] sm:$0xff] %v1390_v62  ;;  %v1383_v1 = vpack.c.bf16 %v461_v63, %v459_v57  ;;  %v1391_v2 = vpack.c.bf16 %v501_v0, %v499_v58  ;;  %v1775_v57 = vpop.permute.xlu0 %327  ;;  %v1777_v58 = vpop.permute.xlu1 %332 }
  0xf5   : > { %630 = vst [vmem:[%s1735_s26 + $0x8] sm:$0xff] %v1383_v1  ;;  %638 = vst [vmem:[%s1735_s26 + $0x48] sm:$0xff] %v1391_v2  ;;  %v464_v5 = vpop.f32.mrb[4].mxu0  ;;  %v504_v6 = vpop.f32.mrb[4].mxu1 }
  0xf6   : > { %v465_v7 = vadd.f32 %v464_v5, %v1709_v38  ;;  %v466_v8 = vpop.f32.mrb[5].mxu0  ;;  %v505_v9 = vadd.f32 %v504_v6, %v1743_v3  ;;  %v506_v10 = vpop.f32.mrb[5].mxu1 }
  0xf7   : > { %v467_v11 = vadd.f32 %v466_v8, %v1709_v38  ;;  %v507_v12 = vadd.f32 %v506_v10, %v1743_v3  ;;  %v468_v13 = vpop.f32.mrb[6].mxu0  ;;  %v508_v14 = vpop.f32.mrb[6].mxu1 }
  0xf8   : > { %v469_v15 = vadd.f32 %v468_v13, %v1713_v40  ;;  %v509_v16 = vadd.f32 %v508_v14, %v1745_v4  ;;  %v470_v17 = vpop.f32.mrb[7].mxu0  ;;  %v510_v18 = vpop.f32.mrb[7].mxu1 }
  0xf9   : > { %v1384_v19 = vpack.c.bf16 %v467_v11, %v465_v7  ;;  %v1392_v20 = vpack.c.bf16 %v507_v12, %v505_v9  ;;  %v471_v21 = vadd.f32 %v470_v17, %v1713_v40  ;;  %v511_v22 = vadd.f32 %v510_v18, %v1745_v4 }
  0xfb   : > { %631 = vst [vmem:[%s1735_s26 + $0x10] sm:$0xff] %v1384_v19  ;;  %639 = vst [vmem:[%s1735_s26 + $0x50] sm:$0xff] %v1392_v20  ;;  %v1385_v23 = vpack.c.bf16 %v471_v21, %v469_v15  ;;  %v1393_v24 = vpack.c.bf16 %v511_v22, %v509_v16 }
  0xfd   : > { %632 = vst [vmem:[%s1735_s26 + $0x18] sm:$0xff] %v1385_v23  ;;  %640 = vst [vmem:[%s1735_s26 + $0x58] sm:$0xff] %v1393_v24  ;;  %v474_v27 = vpop.f32.mrb[8].mxu0  ;;  %v514_v28 = vpop.f32.mrb[8].mxu1 }
  0xfe   : > { %v475_v29 = vadd.f32 %v474_v27, %v1715_v41  ;;  %v476_v30 = vpop.f32.mrb[9].mxu0  ;;  %v515_v31 = vadd.f32 %v514_v28, %v1759_v25  ;;  %v516_v32 = vpop.f32.mrb[9].mxu1 }
  0xff   : > { %v477_v33 = vadd.f32 %v476_v30, %v1715_v41  ;;  %v517_v34 = vadd.f32 %v516_v32, %v1759_v25  ;;  %v478_v35 = vpop.f32.mrb[10].mxu0  ;;  %v518_v36 = vpop.f32.mrb[10].mxu1 }
 0x100   : > { %v479_v47 = vadd.f32 %v478_v35, %v1717_v42  ;;  %v519_v48 = vadd.f32 %v518_v36, %v1761_v26  ;;  %v480_v49 = vpop.f32.mrb[11].mxu0  ;;  %v520_v50 = vpop.f32.mrb[11].mxu1 }
 0x101   : > { %v1386_v51 = vpack.c.bf16 %v477_v33, %v475_v29  ;;  %v1394_v52 = vpack.c.bf16 %v517_v34, %v515_v31  ;;  %v481_v53 = vadd.f32 %v480_v49, %v1717_v42  ;;  %v521_v54 = vadd.f32 %v520_v50, %v1761_v26 }
 0x103   : > { %633 = vst [vmem:[%s1735_s26 + $0x20] sm:$0xff] %v1386_v51  ;;  %641 = vst [vmem:[%s1735_s26 + $0x60] sm:$0xff] %v1394_v52  ;;  %v1387_v55 = vpack.c.bf16 %v481_v53, %v479_v47  ;;  %v1395_v56 = vpack.c.bf16 %v521_v54, %v519_v48 }
 0x105   : > { %634 = vst [vmem:[%s1735_s26 + $0x28] sm:$0xff] %v1387_v55  ;;  %642 = vst [vmem:[%s1735_s26 + $0x68] sm:$0xff] %v1395_v56  ;;  %v484_v59 = vpop.f32.mrb[12].mxu0  ;;  %v524_v60 = vpop.f32.mrb[12].mxu1 }
 0x106   : > { %v485_v61 = vadd.f32 %v484_v59, %v1719_v43  ;;  %v486_v62 = vpop.f32.mrb[13].mxu0  ;;  %v525_v63 = vadd.f32 %v524_v60, %v1775_v57  ;;  %v526_v0 = vpop.f32.mrb[13].mxu1 }
 0x107   : > { %v487_v1 = vadd.f32 %v486_v62, %v1719_v43  ;;  %v527_v2 = vadd.f32 %v526_v0, %v1775_v57  ;;  %v488_v5 = vpop.f32.mrb[14].mxu0  ;;  %v528_v6 = vpop.f32.mrb[14].mxu1 }
 0x108   : > { %v489_v7 = vadd.f32 %v488_v5, %v1721_v44  ;;  %v529_v8 = vadd.f32 %v528_v6, %v1777_v58  ;;  %v490_v9 = vpop.f32.mrb[15].mxu0  ;;  %v530_v10 = vpop.f32.mrb[15].mxu1 }
 0x109   : > { %v1388_v11 = vpack.c.bf16 %v487_v1, %v485_v61  ;;  %v1396_v12 = vpack.c.bf16 %v527_v2, %v525_v63  ;;  %v491_v13 = vadd.f32 %v490_v9, %v1721_v44  ;;  %v531_v14 = vadd.f32 %v530_v10, %v1777_v58 }
 0x10b   : > { %635 = vst [vmem:[%s1735_s26 + $0x30] sm:$0xff] %v1388_v11  ;;  %643 = vst [vmem:[%s1735_s26 + $0x70] sm:$0xff] %v1396_v12  ;;  %v1389_v15 = vpack.c.bf16 %v491_v13, %v489_v7  ;;  %v1397_v16 = vpack.c.bf16 %v531_v14, %v529_v8 }
 0x10d   : > { %636 = vst [vmem:[%s1735_s26 + $0x38] sm:$0xff] %v1389_v15  ;;  %644 = vst [vmem:[%s1735_s26 + $0x78] sm:$0xff] %v1397_v16  ;;  %v704_v17 = vpop.f32.mrb[16].mxu1  ;;  %v955_v18 = vpop.f32.mrb[16].mxu0 }
 0x10e   : > { %v705_v19 = vadd.f32 %v704_v17, %v1707_v37  ;;  %v956_v20 = vadd.f32 %v955_v18, %v1707_v37  ;;  %v706_v21 = vpop.f32.mrb[17].mxu1  ;;  %v957_v22 = vpop.f32.mrb[17].mxu0 }
 0x10f   : > { %v707_v23 = vadd.f32 %v706_v21, %v1707_v37  ;;  %v958_v24 = vadd.f32 %v957_v22, %v1707_v37  ;;  %v708_v27 = vpop.f32.mrb[18].mxu1  ;;  %v959_v28 = vpop.f32.mrb[18].mxu0 }
 0x110   : > { %v709_v29 = vadd.f32 %v708_v27, %v1711_v39  ;;  %v960_v30 = vadd.f32 %v959_v28, %v1711_v39  ;;  %v710_v31 = vpop.f32.mrb[19].mxu1  ;;  %v961_v32 = vpop.f32.mrb[19].mxu0 }
 0x111   : > { %v1398_v33 = vpack.c.bf16 %v707_v23, %v705_v19  ;;  %v1414_v34 = vpack.c.bf16 %v958_v24, %v956_v20  ;;  %v711_v35 = vadd.f32 %v710_v31, %v1711_v39  ;;  %v962_v36 = vadd.f32 %v961_v32, %v1711_v39 }
 0x113   : > { %1314 = vst [vmem:[%s1735_s26 + $0x80] sm:$0xff] %v1398_v33  ;;  %v1399_v47 = vpack.c.bf16 %v711_v35, %v709_v29  ;;  %v1415_v48 = vpack.c.bf16 %v962_v36, %v960_v30  ;;  %1362 = vst [vmem:[%s1735_s26 + $0x100] sm:$0xff] %v1414_v34 }
 0x115   : > { %1315 = vst [vmem:[%s1735_s26 + $0x88] sm:$0xff] %v1399_v47  ;;  %v714_v37 = vpop.f32.mrb[20].mxu1  ;;  %v965_v49 = vpop.f32.mrb[20].mxu0  ;;  %1363 = vst [vmem:[%s1735_s26 + $0x108] sm:$0xff] %v1415_v48 }
 0x116   : > { %v715_v50 = vadd.f32 %v714_v37, %v1709_v38  ;;  %v966_v51 = vadd.f32 %v965_v49, %v1709_v38  ;;  %v716_v52 = vpop.f32.mrb[21].mxu1  ;;  %v967_v53 = vpop.f32.mrb[21].mxu0 }
 0x117   : > { %v717_v54 = vadd.f32 %v716_v52, %v1709_v38  ;;  %v968_v39 = vadd.f32 %v967_v53, %v1709_v38  ;;  %v718_v55 = vpop.f32.mrb[22].mxu1  ;;  %v969_v56 = vpop.f32.mrb[22].mxu0 }
 0x118   : > { %v719_v59 = vadd.f32 %v718_v55, %v1713_v40  ;;  %v970_v60 = vadd.f32 %v969_v56, %v1713_v40  ;;  %v720_v61 = vpop.f32.mrb[23].mxu1  ;;  %v971_v62 = vpop.f32.mrb[23].mxu0 }
 0x119   : > { %v1400_v63 = vpack.c.bf16 %v717_v54, %v715_v50  ;;  %v1416_v0 = vpack.c.bf16 %v968_v39, %v966_v51  ;;  %v721_v1 = vadd.f32 %v720_v61, %v1713_v40  ;;  %v972_v2 = vadd.f32 %v971_v62, %v1713_v40 }
 0x11b   : > { %1316 = vst [vmem:[%s1735_s26 + $0x90] sm:$0xff] %v1400_v63  ;;  %v1401_v5 = vpack.c.bf16 %v721_v1, %v719_v59  ;;  %v1417_v6 = vpack.c.bf16 %v972_v2, %v970_v60  ;;  %1364 = vst [vmem:[%s1735_s26 + $0x110] sm:$0xff] %v1416_v0 }
 0x11d   : > { %1317 = vst [vmem:[%s1735_s26 + $0x98] sm:$0xff] %v1401_v5  ;;  %v724_v38 = vpop.f32.mrb[24].mxu1  ;;  %v975_v7 = vpop.f32.mrb[24].mxu0  ;;  %1365 = vst [vmem:[%s1735_s26 + $0x118] sm:$0xff] %v1417_v6 }
 0x11e   : > { %v725_v8 = vadd.f32 %v724_v38, %v1715_v41  ;;  %v976_v9 = vadd.f32 %v975_v7, %v1715_v41  ;;  %v726_v10 = vpop.f32.mrb[25].mxu1  ;;  %v977_v11 = vpop.f32.mrb[25].mxu0 }
 0x11f   : > { %v727_v12 = vadd.f32 %v726_v10, %v1715_v41  ;;  %v978_v40 = vadd.f32 %v977_v11, %v1715_v41  ;;  %v728_v13 = vpop.f32.mrb[26].mxu1  ;;  %v979_v14 = vpop.f32.mrb[26].mxu0 }
 0x120   : > { %v729_v15 = vadd.f32 %v728_v13, %v1717_v42  ;;  %v980_v16 = vadd.f32 %v979_v14, %v1717_v42  ;;  %v730_v17 = vpop.f32.mrb[27].mxu1  ;;  %v981_v18 = vpop.f32.mrb[27].mxu0 }
 0x121   : > { %v1402_v19 = vpack.c.bf16 %v727_v12, %v725_v8  ;;  %v1418_v20 = vpack.c.bf16 %v978_v40, %v976_v9  ;;  %v731_v21 = vadd.f32 %v730_v17, %v1717_v42  ;;  %v982_v22 = vadd.f32 %v981_v18, %v1717_v42 }
 0x123   : > { %1318 = vst [vmem:[%s1735_s26 + $0xa0] sm:$0xff] %v1402_v19  ;;  %v1403_v23 = vpack.c.bf16 %v731_v21, %v729_v15  ;;  %v1419_v24 = vpack.c.bf16 %v982_v22, %v980_v16  ;;  %1366 = vst [vmem:[%s1735_s26 + $0x120] sm:$0xff] %v1418_v20 }
 0x125   : > { %1319 = vst [vmem:[%s1735_s26 + $0xa8] sm:$0xff] %v1403_v23  ;;  %v734_v41 = vpop.f32.mrb[28].mxu1  ;;  %v985_v27 = vpop.f32.mrb[28].mxu0  ;;  %1367 = vst [vmem:[%s1735_s26 + $0x128] sm:$0xff] %v1419_v24 }
 0x126   : > { %v735_v28 = vadd.f32 %v734_v41, %v1719_v43  ;;  %v986_v29 = vadd.f32 %v985_v27, %v1719_v43  ;;  %v736_v30 = vpop.f32.mrb[29].mxu1  ;;  %v987_v31 = vpop.f32.mrb[29].mxu0 }
 0x127   : > { %v737_v32 = vadd.f32 %v736_v30, %v1719_v43  ;;  %v988_v42 = vadd.f32 %v987_v31, %v1719_v43  ;;  %v738_v33 = vpop.f32.mrb[30].mxu1  ;;  %v989_v34 = vpop.f32.mrb[30].mxu0 }
 0x128   : > { %v739_v35 = vadd.f32 %v738_v33, %v1721_v44  ;;  %v990_v36 = vadd.f32 %v989_v34, %v1721_v44  ;;  %v740_v47 = vpop.f32.mrb[31].mxu1  ;;  %v991_v48 = vpop.f32.mrb[31].mxu0 }
 0x129   : > { %v1404_v37 = vpack.c.bf16 %v737_v32, %v735_v28  ;;  %v1420_v49 = vpack.c.bf16 %v988_v42, %v986_v29  ;;  %v741_v50 = vadd.f32 %v740_v47, %v1721_v44  ;;  %v992_v51 = vadd.f32 %v991_v48, %v1721_v44 }
 0x12b   : > { %1320 = vst [vmem:[%s1735_s26 + $0xb0] sm:$0xff] %v1404_v37  ;;  %v1405_v52 = vpack.c.bf16 %v741_v50, %v739_v35  ;;  %v1421_v53 = vpack.c.bf16 %v992_v51, %v990_v36  ;;  %1368 = vst [vmem:[%s1735_s26 + $0x130] sm:$0xff] %v1420_v49 }
 0x12d   : > { %1321 = vst [vmem:[%s1735_s26 + $0xb8] sm:$0xff] %v1405_v52  ;;  %v744_v43 = vpop.f32.mrb[32].mxu1  ;;  %v995_v54 = vpop.f32.mrb[32].mxu0  ;;  %1369 = vst [vmem:[%s1735_s26 + $0x138] sm:$0xff] %v1421_v53 }
 0x12e   : > { %v745_v39 = vadd.f32 %v744_v43, %v1723_v45  ;;  %v996_v55 = vadd.f32 %v995_v54, %v1723_v45  ;;  %v746_v56 = vpop.f32.mrb[33].mxu1  ;;  %v997_v59 = vpop.f32.mrb[33].mxu0 }
 0x12f   : > { %v747_v60 = vadd.f32 %v746_v56, %v1723_v45  ;;  %v998_v44 = vadd.f32 %v997_v59, %v1723_v45  ;;  %v748_v61 = vpop.f32.mrb[34].mxu1  ;;  %v999_v62 = vpop.f32.mrb[34].mxu0 }
 0x130   : > { %v749_v63 = vadd.f32 %v748_v61, %v1725_v46  ;;  %v1000_v0 = vadd.f32 %v999_v62, %v1725_v46  ;;  %v750_v1 = vpop.f32.mrb[35].mxu1  ;;  %v1001_v2 = vpop.f32.mrb[35].mxu0 }
 0x131   : > { %v1406_v5 = vpack.c.bf16 %v747_v60, %v745_v39  ;;  %v1422_v6 = vpack.c.bf16 %v998_v44, %v996_v55  ;;  %v751_v38 = vadd.f32 %v750_v1, %v1725_v46  ;;  %v1002_v7 = vadd.f32 %v1001_v2, %v1725_v46 }
 0x133   : > { %1322 = vst [vmem:[%s1735_s26 + $0xc0] sm:$0xff] %v1406_v5  ;;  %v1407_v8 = vpack.c.bf16 %v751_v38, %v749_v63  ;;  %v1423_v9 = vpack.c.bf16 %v1002_v7, %v1000_v0  ;;  %1370 = vst [vmem:[%s1735_s26 + $0x140] sm:$0xff] %v1422_v6 }
 0x135   : > { %1323 = vst [vmem:[%s1735_s26 + $0xc8] sm:$0xff] %v1407_v8  ;;  %v754_v45 = vpop.f32.mrb[36].mxu1  ;;  %v1005_v10 = vpop.f32.mrb[36].mxu0  ;;  %1371 = vst [vmem:[%s1735_s26 + $0x148] sm:$0xff] %v1423_v9 }
 0x136   : > { %v755_v11 = vadd.f32 %v754_v45, %v1743_v3  ;;  %v1006_v12 = vadd.f32 %v1005_v10, %v1743_v3  ;;  %v756_v40 = vpop.f32.mrb[37].mxu1  ;;  %v1007_v13 = vpop.f32.mrb[37].mxu0 }
 0x137   : > { %v757_v14 = vadd.f32 %v756_v40, %v1743_v3  ;;  %v1008_v46 = vadd.f32 %v1007_v13, %v1743_v3  ;;  %v758_v15 = vpop.f32.mrb[38].mxu1  ;;  %v1009_v16 = vpop.f32.mrb[38].mxu0 }
 0x138   : > { %v759_v17 = vadd.f32 %v758_v15, %v1745_v4  ;;  %v1010_v18 = vadd.f32 %v1009_v16, %v1745_v4  ;;  %v760_v19 = vpop.f32.mrb[39].mxu1  ;;  %v1011_v20 = vpop.f32.mrb[39].mxu0 }
 0x139   : > { %v1408_v21 = vpack.c.bf16 %v757_v14, %v755_v11  ;;  %v1424_v22 = vpack.c.bf16 %v1008_v46, %v1006_v12  ;;  %v761_v23 = vadd.f32 %v760_v19, %v1745_v4  ;;  %v1012_v24 = vadd.f32 %v1011_v20, %v1745_v4 }
 0x13b   : > { %1324 = vst [vmem:[%s1735_s26 + $0xd0] sm:$0xff] %v1408_v21  ;;  %v1409_v41 = vpack.c.bf16 %v761_v23, %v759_v17  ;;  %v1425_v27 = vpack.c.bf16 %v1012_v24, %v1010_v18  ;;  %1372 = vst [vmem:[%s1735_s26 + $0x150] sm:$0xff] %v1424_v22 }
 0x13d   : > { %1325 = vst [vmem:[%s1735_s26 + $0xd8] sm:$0xff] %v1409_v41  ;;  %v764_v3 = vpop.f32.mrb[40].mxu1  ;;  %v1015_v28 = vpop.f32.mrb[40].mxu0  ;;  %1373 = vst [vmem:[%s1735_s26 + $0x158] sm:$0xff] %v1425_v27 }
 0x13e   : > { %v765_v29 = vadd.f32 %v764_v3, %v1759_v25  ;;  %v1016_v30 = vadd.f32 %v1015_v28, %v1759_v25  ;;  %v766_v31 = vpop.f32.mrb[41].mxu1  ;;  %v1017_v32 = vpop.f32.mrb[41].mxu0 }
 0x13f   : > { %v767_v42 = vadd.f32 %v766_v31, %v1759_v25  ;;  %v1018_v4 = vadd.f32 %v1017_v32, %v1759_v25  ;;  %v768_v33 = vpop.f32.mrb[42].mxu1  ;;  %v1019_v34 = vpop.f32.mrb[42].mxu0 }
 0x140   : > { %v769_v35 = vadd.f32 %v768_v33, %v1761_v26  ;;  %v1020_v36 = vadd.f32 %v1019_v34, %v1761_v26  ;;  %v770_v47 = vpop.f32.mrb[43].mxu1  ;;  %v1021_v48 = vpop.f32.mrb[43].mxu0 }
 0x141   : > { %v1410_v37 = vpack.c.bf16 %v767_v42, %v765_v29  ;;  %v1426_v49 = vpack.c.bf16 %v1018_v4, %v1016_v30  ;;  %v771_v50 = vadd.f32 %v770_v47, %v1761_v26  ;;  %v1022_v51 = vadd.f32 %v1021_v48, %v1761_v26 }
 0x143   : > { %1326 = vst [vmem:[%s1735_s26 + $0xe0] sm:$0xff] %v1410_v37  ;;  %v1411_v52 = vpack.c.bf16 %v771_v50, %v769_v35  ;;  %v1427_v53 = vpack.c.bf16 %v1022_v51, %v1020_v36  ;;  %1374 = vst [vmem:[%s1735_s26 + $0x160] sm:$0xff] %v1426_v49 }
 0x145   : > { %1327 = vst [vmem:[%s1735_s26 + $0xe8] sm:$0xff] %v1411_v52  ;;  %v774_v25 = vpop.f32.mrb[44].mxu1  ;;  %v1025_v43 = vpop.f32.mrb[44].mxu0  ;;  %1375 = vst [vmem:[%s1735_s26 + $0x168] sm:$0xff] %v1427_v53 }
 0x146   : > { %v775_v54 = vadd.f32 %v774_v25, %v1775_v57  ;;  %v1026_v39 = vadd.f32 %v1025_v43, %v1775_v57  ;;  %v776_v55 = vpop.f32.mrb[45].mxu1  ;;  %v1027_v56 = vpop.f32.mrb[45].mxu0 }
 0x147   : > { %v777_v59 = vadd.f32 %v776_v55, %v1775_v57  ;;  %v1028_v26 = vadd.f32 %v1027_v56, %v1775_v57  ;;  %v778_v60 = vpop.f32.mrb[46].mxu1  ;;  %v1029_v44 = vpop.f32.mrb[46].mxu0 }
 0x148   : > { %v779_v61 = vadd.f32 %v778_v60, %v1777_v58  ;;  %v1030_v62 = vadd.f32 %v1029_v44, %v1777_v58  ;;  %v780_v63 = vpop.f32.mrb[47].mxu1  ;;  %v1031_v0 = vpop.f32.mrb[47].mxu0 }
 0x149   : > { %v1412_v1 = vpack.c.bf16 %v777_v59, %v775_v54  ;;  %v1428_v2 = vpack.c.bf16 %v1028_v26, %v1026_v39  ;;  %v781_v5 = vadd.f32 %v780_v63, %v1777_v58  ;;  %v1032_v6 = vadd.f32 %v1031_v0, %v1777_v58 }
 0x14b   : > { %1328 = vst [vmem:[%s1735_s26 + $0xf0] sm:$0xff] %v1412_v1  ;;  %v1413_v38 = vpack.c.bf16 %v781_v5, %v779_v61  ;;  %v1429_v7 = vpack.c.bf16 %v1032_v6, %v1030_v62  ;;  %1376 = vst [vmem:[%s1735_s26 + $0x170] sm:$0xff] %v1428_v2 }
 0x14d   : > { %1329 = vst [vmem:[%s1735_s26 + $0xf8] sm:$0xff] %v1413_v38  ;;  %1377 = vst [vmem:[%s1735_s26 + $0x178] sm:$0xff] %v1429_v7 }
 0x14e PF: > { %s13_s14 = sadd.s32 1, %s1509_s14   ;;  %s1902_s12 = smov %s1505_s13 }
 0x14f   : > { %p10_p5 = scmp.ge.s32.totalorder %s13_s14, 4   ;;  %s1903_s13 = smov %s1905_s15 }
 0x151   :  { %12 = sbr.rel (!%p10_p5) target bundleno = 2 (0x2), region = 66 }

</bundles_post_ra>
